<compile_context>
chip_gen: v7x
topology: tpu7x:2x2x1
jax: 0.10.0
libtpu: 0.0.40
codegen_flags: <defaults>
</compile_context>

<pallas_src>
import jax
import jax.numpy as jnp
from jax.experimental import pallas as pl
from jax.experimental.pallas import tpu as pltpu


def _fused_mlp_softmax_kernel(x_ref, w_ref, o_ref):
    # x: [TB, 64] (bf16 or f32), w: [64, n_out] -> o: [TB, n_out] f32 softmax probabilities.
    logits = jnp.dot(x_ref[...], w_ref[...], preferred_element_type=jnp.float32)
    # Numerically stable row-wise softmax (dim=1), all in f32.
    m = jnp.max(logits, axis=1, keepdims=True)
    e = jnp.exp(logits - m)
    denom = jnp.sum(e, axis=1, keepdims=True)
    # Exact normalization: kernel is DMA/HBM-bound, so the divide is fully hidden.
    o_ref[...] = (e / denom).astype(o_ref.dtype)


def prepare_fused_weight(w1, w2, dtype=jnp.bfloat16):
    """w1: [32, 64], w2: [10, 32] (torch nn.Linear layout). Returns fused [64, 10].

    Do this ONCE per set of weights; the hot path only sees the single fused weight."""
    return (w1.T @ w2.T).astype(dtype)  # [64, 10]


def sample_network_forward(x, w_fused, *, tb=4096):
    """x: [B, 64] (bf16 recommended, f32 accepted), w_fused: [64, n_out].

    Returns softmax probabilities [B, n_out] in f32."""
    B, d_in = x.shape
    d_in_w, n_out = w_fused.shape
    assert d_in == d_in_w, f"weight/input mismatch: {d_in} vs {d_in_w}"

    # Batch tile: big enough to amortize per-step overhead; multiple of 8 (sublane) unless it
    # covers the whole batch (a full-extent block is always legal).
    if B <= tb:
        TB = B
    else:
        TB = max(8, (tb // 8) * 8)
    grid = (pl.cdiv(B, TB),)  # ragged trailing block handled by Pallas; no host-side pad/copy.

    bpe_x = jnp.dtype(x.dtype).itemsize
    bpe_w = jnp.dtype(w_fused.dtype).itemsize
    cost = pl.CostEstimate(
        flops=2 * B * d_in * n_out,
        transcendentals=B * n_out,
        bytes_accessed=bpe_x * B * d_in + bpe_w * d_in * n_out + 4 * B * n_out,
    )

    return pl.pallas_call(
        _fused_mlp_softmax_kernel,
        out_shape=jax.ShapeDtypeStruct((B, n_out), jnp.float32),
        grid=grid,
        in_specs=[
            pl.BlockSpec((TB, d_in), lambda i: (i, 0)),     # batch-tiled activations
            pl.BlockSpec((d_in, n_out), lambda i: (0, 0)),  # fused weight stays resident
        ],
        out_specs=pl.BlockSpec((TB, n_out), lambda i: (i, 0)),  # only real columns hit HBM
        compiler_params=pltpu.CompilerParams(
            dimension_semantics=("parallel",),  # shard batch tiles across TCs (v7x)
        ),
        cost_estimate=cost,
    )(x, w_fused)


if __name__ == "__main__":
    key = jax.random.PRNGKey(0)
    k_x, k_w1, k_w2 = jax.random.split(key, 3)

    B, IN, HID, OUT = 8, 64, 32, 10
    x_f32 = jax.random.normal(k_x, (B, IN), dtype=jnp.float32)
    # torch nn.Linear layout: [out_features, in_features]
    w1 = jax.random.uniform(k_w1, (HID, IN), dtype=jnp.float32,
                            minval=-1.0 / jnp.sqrt(IN), maxval=1.0 / jnp.sqrt(IN))
    w2 = jax.random.uniform(k_w2, (OUT, HID), dtype=jnp.float32,
                            minval=-1.0 / jnp.sqrt(HID), maxval=1.0 / jnp.sqrt(HID))

    # One-time weight prep (not per call); feed activations as bf16 to halve HBM reads.
    w_fused = prepare_fused_weight(w1, w2, dtype=jnp.bfloat16)  # [64, 10] bf16
    x = x_f32.astype(jnp.bfloat16)

    y = sample_network_forward(x, w_fused)
    jax.block_until_ready(y)

    # Reference with the same bf16-rounded inputs, f32 math (matches the kernel's f32 accumulate).
    ref = jax.nn.softmax(x.astype(jnp.float32) @ w_fused.astype(jnp.float32), axis=1)
    assert y.shape == (B, OUT), f"bad output shape {y.shape}"
    assert jnp.allclose(y, ref, atol=1e-3, rtol=1e-3), "mismatch vs bf16-input reference"
    assert jnp.allclose(jnp.sum(y, axis=1), 1.0, atol=1e-4), "softmax rows must sum to 1"
    # Full-precision reference (f32 weights/activations): only bf16 input rounding differs.
    ref_fp32 = jax.nn.softmax(x_f32 @ w1.T @ w2.T, axis=1)
    assert jnp.allclose(y, ref_fp32, atol=3e-2), "mismatch vs f32 reference beyond bf16 tolerance"

    print("KERNEL_OK")
</pallas_src>

<mosaic_0001>
module attributes {stable_mosaic.version = 11 : i64} {
  func.func @_fused_mlp_softmax_kernel(%arg0: i32, %arg1: memref<8x64xbf16, #tpu.memory_space<vmem>>, %arg2: memref<64x10xbf16, #tpu.memory_space<vmem>>, %arg3: memref<8x10xf32, #tpu.memory_space<vmem>>) attributes {dimension_semantics = [#tpu.dimension_semantics<parallel>], iteration_bounds = array<i64: 1>, scalar_prefetch = 0 : i64, scratch_operands = 0 : i64, tpu.core_type = #tpu.core_type<tc>, window_params = [{transform_indices = @transform_0, window_bounds = array<i64: 8, 64>}, {pipeline_mode = #tpu.pipeline_mode<synchronous>, transform_indices = @transform_1, window_bounds = array<i64: 64, 10>}, {transform_indices = @transform_2, window_bounds = array<i64: 8, 10>}]} {
    %c0 = arith.constant 0 : index
    %c0_0 = arith.constant 0 : index
    %0 = vector.load %arg1[%c0, %c0_0] : memref<8x64xbf16, #tpu.memory_space<vmem>>, vector<8x64xbf16>
    %c0_1 = arith.constant 0 : index
    %c0_2 = arith.constant 0 : index
    %1 = vector.load %arg2[%c0_1, %c0_2] : memref<64x10xbf16, #tpu.memory_space<vmem>>, vector<64x10xbf16>
    %cst = arith.constant dense<0.000000e+00> : vector<8x10xf32>
    %2 = tpu.matmul %0, %1, %cst {dimension_numbers = #tpu.dot_dimension_numbers<[1], [0], [0], [1], [0, 0, 1, 1], [], []>} : vector<8x64xbf16>, vector<64x10xbf16>, vector<8x10xf32> -> vector<8x10xf32>
    %cst_3 = arith.constant dense<0xFF800000> : vector<8xf32>
    %3 = vector.multi_reduction <maximumf>, %2, %cst_3 [1] : vector<8x10xf32> to vector<8xf32>
    %4 = vector.shape_cast %3 : vector<8xf32> to vector<8x1xf32>
    %5 = vector.broadcast %4 : vector<8x1xf32> to vector<8x10xf32>
    %6 = arith.subf %2, %5 : vector<8x10xf32>
    %7 = math.exp %6 : vector<8x10xf32>
    %cst_4 = arith.constant dense<0.000000e+00> : vector<8xf32>
    %8 = vector.multi_reduction <add>, %7, %cst_4 [1] : vector<8x10xf32> to vector<8xf32>
    %9 = vector.shape_cast %8 : vector<8xf32> to vector<8x1xf32>
    %10 = vector.broadcast %9 : vector<8x1xf32> to vector<8x10xf32>
    %11 = arith.divf %7, %10 : vector<8x10xf32>
    %c0_5 = arith.constant 0 : index
    %c0_6 = arith.constant 0 : index
    %12 = vector.load %arg3[%c0_5, %c0_6] : memref<8x10xf32, #tpu.memory_space<vmem>>, vector<8x10xf32>
    tpu.vector_store %arg3[%c0_5, %c0_6], %11 {strides = array<i32>} : memref<8x10xf32, #tpu.memory_space<vmem>>, vector<8x10xf32>,
    return
  }
  func.func @transform_0(%arg0: i32) -> (i32, i32) {
    %c0_i32 = arith.constant 0 : i32
    %c0_i32_0 = arith.constant 0 : i32
    return %arg0, %c0_i32 : i32, i32
  }
  func.func @transform_1(%arg0: i32) -> (i32, i32) {
    %c0_i32 = arith.constant 0 : i32
    %c0_i32_0 = arith.constant 0 : i32
    %c0_i32_1 = arith.constant 0 : i32
    return %c0_i32, %c0_i32_0 : i32, i32
  }
  func.func @transform_2(%arg0: i32) -> (i32, i32) {
    %c0_i32 = arith.constant 0 : i32
    %c0_i32_0 = arith.constant 0 : i32
    return %arg0, %c0_i32 : i32, i32
  }
}

</mosaic_0001>

<bundles_post_ra>
// kernel: tpu_custom_call.1
= control target key start
LH: loop header
LB: loop body
LE: loop exit
PB: predicated region body
PF: predicated region fallthrough
CT: control target
= control target key end

     0   :  { %v174_v1 = vmov 0.0   ;;  %vm175_vm0 = vmmov 0   ;;  %s222_s0 = inlined_call_operand.vmem [shape: bf16[8,64], index: 0, kind: input, shape index: {}]   ;;  %s223_s1 = inlined_call_operand.vmem [shape: bf16[64,10], index: 1, kind: input, shape index: {}]   ;;  %s224_s2 = inlined_call_operand.hbm [shape: f32[8,10], index: 2, kind: output, shape index: {}]  }
   0x1   :  { %v142_v0 = vld [vmem:[%s223_s1] sm:$0xff]   ;;  %127 = vmatprep.subr.bf16.mxu0 %v174_v1  ;;  %v143_v2 = vld [vmem:[%s223_s1 + $0x8] sm:$0xff]   ;;  %135 = vmatprep.mubr.msk.bf16.mxu0 %vm175_vm0, %v174_v1 }
   0x2   :  { %128 = vmatpush3.bf16.msra.mxu0 %v142_v0 }
   0x3   :  { %129 = vmatprep.subr.bf16.mxu0 %v174_v1 }
   0x4   :  { %7 = vsyncpa [#allocation3], 0  ;;  %v144_v3 = vld [vmem:[%s223_s1 + $0x10] sm:$0xff]   ;;  %v145_v4 = vld [vmem:[%s223_s1 + $0x18] sm:$0xff]   ;;  %vm46_vm1 = vcmask 523264   ;;  %vm90_vm2 = vcmask 80896  }
   0x5   :  { %v13_v5 = vld [vmem:[%s222_s0] sm:$0xf]  ;;  %s176_s0 = smov [#allocation2]  }
   0x6   :  { %130 = vmatpush3.bf16.msra.mxu0 %v143_v2  ;;  %s109_s1 = sshll.u32 %s176_s0, 4  ;;  %s110_s1 = int_to_ptr.vmem [resolvable:$true] %s109_s1 }
   0x7   :  { %131 = vmatprep.subr.bf16.mxu0 %v174_v1  ;;  %s150_s19 = scalar_lea.vmem %s110_s1, 128  ;;  %p155_p1 = scmp.lt.s32.totalorder %s110_s1, %s110_s1 }
   0x8   :  { %p151_p0 = scmp.ne.s32.totalorder %s110_s1, %s150_s19  ;;  %p156_p2 = scmp.lt.s32.totalorder %s150_s19, %s150_s19 }
   0xa   :  { %132 = vmatpush3.bf16.msra.mxu0 %v144_v3  ;;  %p157_p3 = por %p156_p2, %p155_p1 }
   0xb   :  { %133 = vmatprep.subr.bf16.mxu0 %v174_v1 }
   0xc   :  { %p158_p4 = pnand %p157_p3, %p151_p0 }
   0xe   :  { %134 = vmatpush3.bf16.msra.mxu0 %v145_v4 }
  0x11   :  { %136 = vmatmul.mubr.msk.bf16.vlgmr.msra.gmra.mrb[0].mxu0 %vm46_vm1, %v13_v5 }
  0xe4   :  { %v84_v6 = vpop.f32.mrb[0].mxu0 }
  0xe5   :  { %v137_v7 = vpop.f32.mrb[1].mxu0  ;;  %v91_v8 = vsel %vm90_vm2, %v84_v6, -inf }
  0xe6   :  { %92 = vmax.xlane.f32.xlu0 %v91_v8  ;;  %v87_v9 = vpop.f32.mrb[2].mxu0 }
  0xe7   :  { %v138_v10 = vpop.f32.mrb[3].mxu0 }
 0x173   :  { %v93_v11 = vpop.xlane.xlu0 %92 }
 0x174   :  { %v94_v12 = vsub.f32 %v84_v6, %v93_v11 }
 0x176   :  { %v95_v13 = vmul.f32 1.442695, %v94_v12 }
 0x178   :  { %146 = vpow2.f32 %v95_v13 }
 0x182   :  { %v147_v14 = vpop.eup %146 }
 0x183   :  { %v97_v15 = vsel %vm90_vm2, %v147_v14, 0.0 }
 0x184   :  { %98 = vadd.xlane.f32.xlu0 %v97_v15 }
 0x211   :  { %v99_v16 = vpop.xlane.xlu0 %98 }
 0x212   :  { %148 = vrcp.f32 %v99_v16 }
 0x21c   :  { %v149_v17 = vpop.eup %148 }
 0x21d   :  { %v101_v18 = vmul.f32 %v149_v17, %v147_v14 }
 0x21f   :  { %102 = vst.msk [vmem:[#allocation2] sm:$0xff] %vm90_vm2, %v101_v18 }
 0x220   :  { %161 = shalt.err (!%p158_p4)
}
 0x221   :  { %s162_s22 = scalar_lea.hbm %s224_s2, 128 }
 0x222   :  { %p163_p5 = scmp.ne.s32.totalorder %s224_s2, %s162_s22  ;;  %p166_p6 = scmp.lt.u32.totalorder %s162_s22, %s224_s2 }
 0x224   :  { %p168_p7 = pnand %p166_p6, %p163_p5 }
 0x226   :  { %171 = shalt.err (!%p168_p7)
}
 0x227   :  { %112 = dma.vmem_to_hbm [thread:$0]  %s110_s1, 128, %s224_s2, [#allocation3]  }
 0x228   :  { %172 = dma.done.wait [#allocation3], 128  }
 0x229   :  { %173 = vsyncadd [#allocation3], 4294967168 }
 0x22a   :  { %116 = vsyncpa [#allocation3], 1 }

</bundles_post_ra>
